<compile_context>
chip_gen: v6e
topology: v6e:2x2x1
jax: 0.10.0
libtpu: 0.0.40
codegen_flags: <defaults>
</compile_context>

<pallas_src>
import functools

import jax
import jax.numpy as jnp
from jax import lax
from jax.experimental import pallas as pl
from jax.experimental.pallas import tpu as pltpu


def _embedding_kernel(ids_ref,      # SMEM (B*S,) int32 token ids (scalar prefetch)
                      table_hbm,    # HBM  (V, D) embedding table (memory_space=pl.ANY)
                      pe_ref,       # VMEM (tile_s, D) positional-encoding rows
                      out_ref,      # VMEM (1, tile_s, D) output block
                      gather_buf,   # VMEM (tile_s, D) scratch for gathered rows
                      copy_sem,     # DMA semaphore
                      *, seq_len, tile_s, d_model, drop_prob, training, seed):
    b = pl.program_id(0)
    j = pl.program_id(1)
    base = b * seq_len + j * tile_s        # first flattened token of this tile

    # ---- token embedding: per-row DMA gather HBM -> VMEM scratch -----------
    def _issue(t, carry):
        tok = ids_ref[base + t]
        pltpu.make_async_copy(table_hbm.at[pl.ds(tok, 1), :],
                              gather_buf.at[pl.ds(t, 1), :],
                              copy_sem).start()
        return carry
    lax.fori_loop(0, tile_s, _issue, 0)

    def _drain(t, carry):
        # Same-shaped descriptor on the shared semaphore: one wait per copy.
        pltpu.make_async_copy(table_hbm.at[pl.ds(0, 1), :],
                              gather_buf.at[pl.ds(0, 1), :],
                              copy_sem).wait()
        return carry
    lax.fori_loop(0, tile_s, _drain, 0)

    # ---- add positional encoding -------------------------------------------
    y = gather_buf[...] + pe_ref[...]

    # ---- dropout (train mode): drop w.p. p, scale survivors by 1/(1-p) -----
    if training and drop_prob > 0.0:
        r = lax.broadcasted_iota(jnp.int32, (tile_s, d_model), 0)
        c = lax.broadcasted_iota(jnp.int32, (tile_s, d_model), 1)
        # flattened element index, mixed with the seed
        x = (base + r) * d_model + c + jnp.int32(seed)
        # murmur3 fmix32 in wrapping int32 arithmetic (masks emulate logical >>)
        x = x ^ ((x >> 16) & 0xFFFF)
        x = x * jnp.int32(-2048144789)     # 0x85EBCA6B mod 2**32
        x = x ^ ((x >> 13) & 0x7FFFF)
        x = x * jnp.int32(-1028477387)     # 0xC2B2AE35 mod 2**32
        x = x ^ ((x >> 16) & 0xFFFF)
        h = x & jnp.int32(0x7FFFFFFF)      # uniform in [0, 2**31)
        thresh = jnp.int32(int(drop_prob * float(1 << 31)))
        keep = h >= thresh
        y = jnp.where(keep, y * jnp.float32(1.0 / (1.0 - drop_prob)),
                      jnp.zeros_like(y))

    out_ref[0] = y.astype(out_ref.dtype)


def sinusoidal_positional_encoding(max_len, d_model):
    """Standard PositionalEncoding table of shape (max_len, d_model)."""
    pos = jnp.arange(max_len, dtype=jnp.float32)[:, None]
    two_i = jnp.arange(0, d_model, 2, dtype=jnp.float32)
    angle = pos / jnp.power(10000.0, two_i / d_model)
    pe = jnp.zeros((max_len, d_model), dtype=jnp.float32)
    pe = pe.at[:, 0::2].set(jnp.sin(angle))
    pe = pe.at[:, 1::2].set(jnp.cos(angle))
    return pe


def _pick_seq_tile(seq_len, cap):
    """Largest tile <= cap dividing seq_len and satisfying the (8,128) rule."""
    t = min(seq_len, cap)
    while t > 1:
        if seq_len % t == 0 and (t == seq_len or t % 8 == 0):
            return t
        t -= 1
    return 1


def transformer_embedding(ids, emb_table, pe_table, *,
                          drop_prob=0.1, training=True, seed=0,
                          max_tile_tokens=512, out_dtype=jnp.float32):
    """ids: (B, S) int32 -> (B, S, D) embeddings."""
    B, S = ids.shape
    V, D = emb_table.shape
    assert S <= pe_table.shape[0], "sequence length exceeds max_len"

    tile_s = _pick_seq_tile(S, max_tile_tokens)
    num_j = S // tile_s

    ids_flat = ids.reshape(-1).astype(jnp.int32)   # (B*S,) scalar-prefetched to SMEM
    pe = pe_table[:S].astype(jnp.float32)          # (S, D); no per-batch broadcast

    kernel = functools.partial(
        _embedding_kernel,
        seq_len=S, tile_s=tile_s, d_model=D,
        drop_prob=float(drop_prob), training=bool(training),
        seed=int(seed) % (1 << 31))

    grid_spec = pltpu.PrefetchScalarGridSpec(
        num_scalar_prefetch=1,
        grid=(B, num_j),
        in_specs=[
            pl.BlockSpec(memory_space=pl.ANY),                      # table stays in HBM
            pl.BlockSpec((tile_s, D), lambda b, j, ids: (j, 0)),    # PE rows of this tile
        ],
        out_specs=pl.BlockSpec((1, tile_s, D), lambda b, j, ids: (b, j, 0)),
        scratch_shapes=[
            pltpu.VMEM((tile_s, D), jnp.float32),   # gathered embedding rows
            pltpu.SemaphoreType.DMA(()),            # shared DMA completion semaphore
        ],
    )

    out = pl.pallas_call(
        kernel,
        out_shape=jax.ShapeDtypeStruct((B, S, D), out_dtype),
        grid_spec=grid_spec,
        compiler_params=pltpu.CompilerParams(
            dimension_semantics=("parallel", "parallel")),
    )(ids_flat, emb_table.astype(jnp.float32), pe)
    return out


if __name__ == "__main__":
    # Module hyper-parameters (small, consistent with the forward pass).
    vocab_size = 64
    d_model = 32
    max_len = 16
    drop_prob = 0.1
    B, S = 2, 8

    key = jax.random.PRNGKey(0)
    k_emb, k_ids = jax.random.split(key)

    # nn.Embedding default init: N(0, 1)
    emb_table = jax.random.normal(k_emb, (vocab_size, d_model), dtype=jnp.float32)
    pe_table = sinusoidal_positional_encoding(max_len, d_model)
    ids = jax.random.randint(k_ids, (B, S), 0, vocab_size, dtype=jnp.int32)

    ref = emb_table[ids] + pe_table[:S][None, :, :]

    # Eval-mode pass (dropout = identity): verify against a pure-JAX reference.
    out_eval = jax.block_until_ready(
        transformer_embedding(ids, emb_table, pe_table,
                              drop_prob=drop_prob, training=False))
    assert out_eval.shape == (B, S, d_model)
    assert jnp.allclose(out_eval, ref, atol=1e-5, rtol=1e-5)

    # Train-mode pass (dropout active, deterministic in-kernel hash mask).
    out_train = jax.block_until_ready(
        transformer_embedding(ids, emb_table, pe_table,
                              drop_prob=drop_prob, training=True, seed=0))
    assert out_train.shape == (B, S, d_model)
    scale = 1.0 / (1.0 - drop_prob)
    valid = jnp.isclose(out_train, ref * scale, atol=1e-5, rtol=1e-5) | (out_train == 0.0)
    assert bool(jnp.all(valid))

    print("KERNEL_OK")
</pallas_src>

<mosaic_0001>
module attributes {stable_mosaic.version = 11 : i64} {
  func.func @_embedding_kernel(%arg0: i32, %arg1: i32, %arg2: memref<16xi32, #tpu.memory_space<smem>>, %arg3: memref<64x32xf32, #tpu.memory_space<any>>, %arg4: memref<8x32xf32, #tpu.memory_space<vmem>>, %arg5: memref<1x8x32xf32, #tpu.memory_space<vmem>>, %arg6: memref<8x32xf32, #tpu.memory_space<vmem>>, %arg7: memref<!tpu.dma_semaphore, #tpu.memory_space<semaphore_mem>>) attributes {dimension_semantics = [#tpu.dimension_semantics<parallel>, #tpu.dimension_semantics<parallel>], iteration_bounds = array<i64: 2, 1>, scalar_prefetch = 1 : i64, scratch_operands = 2 : i64, tpu.core_type = #tpu.core_type<tc>, window_params = [{}, {transform_indices = @transform_1, window_bounds = array<i64: 8, 32>}, {transform_indices = @transform_2, window_bounds = array<i64: 1, 8, 32>}]} {
    %c8_i32 = arith.constant 8 : i32
    %0 = arith.muli %arg0, %c8_i32 : i32
    %c8_i32_0 = arith.constant 8 : i32
    %1 = arith.muli %arg1, %c8_i32_0 : i32
    %2 = arith.addi %0, %1 : i32
    %c0_i32 = arith.constant 0 : i32
    %c8_i32_1 = arith.constant 8 : i32
    %3 = arith.addi %c0_i32, %c8_i32_1 : i32
    %c1_i32 = arith.constant 1 : i32
    scf.for %arg8 = %c0_i32 to %3 step %c1_i32  : i32 {
      %11 = arith.addi %2, %arg8 : i32
      %12 = arith.index_cast %11 : i32 to index
      %13 = memref.load %arg2[%12] : memref<16xi32, #tpu.memory_space<smem>>
      %c0_i32_12 = arith.constant 0 : i32
      %14 = tpu.memref_slice %arg3[%13, %c0_i32_12] : memref<64x32xf32, #tpu.memory_space<any>> -> memref<1x32xf32, #tpu.memory_space<any>>
      %c0_i32_13 = arith.constant 0 : i32
      %15 = tpu.memref_slice %arg6[%arg8, %c0_i32_13] : memref<8x32xf32, #tpu.memory_space<vmem>> -> memref<1x32xf32, #tpu.memory_space<vmem>>
      tpu.enqueue_dma source(%14 : memref<1x32xf32, #tpu.memory_space<any>>) target(%15 : memref<1x32xf32, #tpu.memory_space<vmem>>) target_semaphore(%arg7 : memref<!tpu.dma_semaphore, #tpu.memory_space<semaphore_mem>>)
    }
    %c8_i32_2 = arith.constant 8 : i32
    %c0_i32_3 = arith.constant 0 : i32
    %c8_i32_4 = arith.constant 8 : i32
    %4 = arith.addi %c0_i32_3, %c8_i32_4 : i32
    %c1_i32_5 = arith.constant 1 : i32
    scf.for %arg8 = %c0_i32_3 to %4 step %c1_i32_5  : i32 {
      %c0_i32_12 = arith.constant 0 : i32
      %c0_i32_13 = arith.constant 0 : i32
      %11 = tpu.memref_slice %arg3[%c0_i32_12, %c0_i32_13] : memref<64x32xf32, #tpu.memory_space<any>> -> memref<1x32xf32, #tpu.memory_space<any>>
      %c0_i32_14 = arith.constant 0 : i32
      %c0_i32_15 = arith.constant 0 : i32
      %12 = tpu.memref_slice %arg6[%c0_i32_14, %c0_i32_15] : memref<8x32xf32, #tpu.memory_space<vmem>> -> memref<1x32xf32, #tpu.memory_space<vmem>>
      tpu.wait_dma2 semaphore(%arg7 : memref<!tpu.dma_semaphore, #tpu.memory_space<semaphore_mem>>) src(%11 : memref<1x32xf32, #tpu.memory_space<any>>) dst(%12 : memref<1x32xf32, #tpu.memory_space<vmem>>)
    }
    %c0 = arith.constant 0 : index
    %c0_6 = arith.constant 0 : index
    %5 = vector.load %arg6[%c0, %c0_6] : memref<8x32xf32, #tpu.memory_space<vmem>>, vector<8x32xf32>
    %c0_7 = arith.constant 0 : index
    %c0_8 = arith.constant 0 : index
    %6 = vector.load %arg4[%c0_7, %c0_8] : memref<8x32xf32, #tpu.memory_space<vmem>>, vector<8x32xf32>
    %7 = arith.addf %5, %6 : vector<8x32xf32>
    %c0_9 = arith.constant 0 : index
    %c0_10 = arith.constant 0 : index
    %c0_11 = arith.constant 0 : index
    %8 = vector.load %arg5[%c0_9, %c0_10, %c0_11] : memref<1x8x32xf32, #tpu.memory_space<vmem>>, vector<1x8x32xf32>
    %9 = vector.shape_cast %8 : vector<1x8x32xf32> to vector<8x32xf32>
    %10 = vector.shape_cast %7 : vector<8x32xf32> to vector<1x8x32xf32>
    tpu.vector_store %arg5[%c0_9, %c0_10, %c0_11], %10 {strides = array<i32>} : memref<1x8x32xf32, #tpu.memory_space<vmem>>, vector<1x8x32xf32>,
    return
  }
  func.func @transform_1(%arg0: i32, %arg1: i32, %arg2: memref<16xi32, #tpu.memory_space<smem>>) -> (i32, i32) {
    %c0_i32 = arith.constant 0 : i32
    %c0_i32_0 = arith.constant 0 : i32
    return %arg1, %c0_i32 : i32, i32
  }
  func.func @transform_2(%arg0: i32, %arg1: i32, %arg2: memref<16xi32, #tpu.memory_space<smem>>) -> (i32, i32, i32) {
    %c0_i32 = arith.constant 0 : i32
    %c0_i32_0 = arith.constant 0 : i32
    return %arg0, %arg1, %c0_i32 : i32, i32, i32
  }
}

</mosaic_0001>

<bundles_post_ra>
// kernel: tpu_custom_call.1
= control target key start
LH: loop header
LB: loop body
LE: loop exit
PB: predicated region body
PF: predicated region fallthrough
CT: control target
= control target key end

     0   :  { %s658_s0 = inlined_call_operand.vmem [shape: s32[16], index: 0, kind: input, shape index: {}]   ;;  %s659_s1 = inlined_call_operand.vmem [shape: f32[64,32], index: 1, kind: input, shape index: {}]   ;;  %s660_s2 = inlined_call_operand.vmem [shape: f32[8,32], index: 2, kind: input, shape index: {}]   ;;  %s661_s3 = inlined_call_operand.hbm [shape: f32[2,8,32], index: 3, kind: output, shape index: {}]  }
   0x1   :  { %s8_s14 = sshll.u32 %s658_s0, 4  ;;  %s9_s14 = int_to_ptr.vmem [resolvable:$true] %s8_s14 }
   0x2   :  { %s405_s15 = scalar_lea.vmem %s9_s14, 16  ;;  %p410_p1 = scmp.lt.s32.totalorder %s9_s14, %s9_s14 }
   0x3   :  { %p406_p0 = scmp.ne.s32.totalorder %s9_s14, %s405_s15  ;;  %p411_p2 = scmp.lt.s32.totalorder %s405_s15, %s405_s15 }
   0x5   :  { %p412_p3 = por %p411_p2, %p410_p1 }
   0x7   :  { %p413_p4 = pnand %p412_p3, %p406_p0 }
   0x9   :  { %416 = shalt.err (!%p413_p4)  }
   0xa   :  { %s515_s16 = smov [#allocation5]  }
   0xb   :  { %11 = dma.vmem_to_smem %s9_s14, 16, %s515_s16, [#allocation4] }
   0xc   :  { %475 = dma.done.wait [#allocation4], 16 }
   0xd   :  { %476 = vsyncadd [#allocation4], 4294967280 }
   0xe   :  { %13 = sfence }
   0xf   :  { %14 = vsyncpa [#allocation7], 0 }
  0x10   :  { %16 = vsyncpa [#allocation7 + $0x1], 0  ;;  %s540_s17 = smov 0   ;;  %s542_s18 = smov 0  }
  0x11   :  { %s544_s0 = smov 0   ;;  %s546_s19 = smov 0  }
  0x12   :  { %s548_s20 = smov 0   ;;  %s550_s21 = smov 0  }
  0x13 LB: > { %s321_s22 = sadd.s32 4294967295, %s505_s21   ;;  %s322_s23 = sadd.s32 4294967294, %s505_s21   ;;  %s505_s21 = sphi %s550_s21, %s22_s21   ;;  %s501_s20 = sphi %s548_s20, %s668_s20   ;;  %s497_s19 = sphi %s546_s19, %s667_s19   ;;  %s493_s0 = sphi %s544_s0, %s666_s0   ;;  %s489_s18 = sphi %s542_s18, %s665_s18   ;;  %s485_s17 = sphi %s540_s17, %s664_s17  }
  0x14   : > { %s34_s24 = sadd.s32 1, %s501_s20  ;;  %s69_s25 = sadd.s32 1, %s493_s0 }
  0x15   : > { %p36_p5 = scmp.ge.s32.totalorder %s34_s24, 2  ;;  %p79_p6 = scmp.ne.s32.totalorder %s493_s0, %s489_s18 }
  0x16   : > { %p80_p7 = scmp.eq.s32.totalorder %s321_s22, 1  ;;  %p85_p8 = scmp.ne.s32.totalorder %s489_s18, %s485_s17 }
  0x17   : > { %s670_s24 = smov (%p36_p5, %s34_s24), 0  ;;  %p86_p10 = scmp.eq.s32.totalorder %s322_s23, 1 }
  0x18   : > { %p580_p9 = por %p80_p7, %p79_p6  ;;  %s64_s27 = ssub.s32 %s501_s20, %s670_s24 }
  0x19   : > { %p325_p11 = scmp.ge.s32.totalorder %s505_s21, 1  ;;  %p67_p12 = scmp.eq.s32.totalorder %s64_s27, 0 }
  0x1a   : > { %p587_p13 = por %p86_p10, %p85_p8  ;;  %p111_p0 = scmp.lt.s32.totalorder %s505_s21, 3 }
  0x1b   : > { %s593_s29 = scalar_select %p67_p12, %s493_s0, %s69_s25  }
  0x1c   : > { %p112_p1 = pnand %p325_p11, %p111_p0 }
  0x1d   : > { %s127_s30 = sand.u32 (!%p112_p1), 1, %s489_s18   ;;  %s327_s4 = sshll.u32 (!%p112_p1), %s497_s19, 3 }
  0x1e   : > { %115 = sbr.rel (%p112_p1) target bundleno = 80 (0x50), region = 24  ;;  %s599_s5 = sshll.u32 (!%p112_p1), %s127_s30, 3 }
  0x1f   : > { %s129_s6 = scalar_lea.vmem (!%p112_p1), [#allocation6], %s599_s5  ;;  %s507_s7 = smov (!%p112_p1), 0  }
  0x23 LB: >> { %s143_s8 = sadd.s32 %s509_s7, %s327_s4  ;;  %s146_s13 = scalar_lea.vmem [#allocation2], %s509_s7  ;;  %s509_s7 = sphi %s507_s7, %s142_s7  }
  0x24   : >> { %s144_s9 = sld [smem:[#allocation5 + %s143_s8]] }
  0x2a   : >> { %s145_s12 = scalar_lea.vmem %s659_s1, %s144_s9 }
  0x2b   : >> { %v165_v0 = vld [vmem:[%s145_s12] sm:$0x1] }
  0x2c   : >> { %166 = vst [vmem:[%s146_s13] sm:$0x1] %v165_v0 }
  0x2d   : >> { %192 = vsyncadd [#allocation3], 16  ;;  %s142_s7 = sadd.s32 1, %s509_s7  }
  0x2e   : >> { %p139_p2 = scmp.ge.s32.totalorder %s142_s7, 8  }
  0x2f   : > { %s511_s14 = smov (%p139_p2), 0  }
  0x30   : > { %141 = sbr.rel (!%p139_p2) target bundleno = 35 (0x23), region = 115 }
  0x35 LB: >> { %477 = dma.done.wait [#allocation3], 16  ;;  %s513_s14 = sphi %s511_s14, %s198_s14  }
  0x36   : >> { %478 = vsyncadd [#allocation3], 4294967280  ;;  %s198_s14 = sadd.s32 1, %s513_s14  }
  0x37   : >> { %p195_p3 = scmp.ge.s32.totalorder %s198_s14, 8  }
  0x38   : > { %v202_v1 = vld [vmem:[#allocation2] sm:$0xff] (%p195_p3)  ;;  %vm205_vm0 = vcmask (%p195_p3), 261120   ;;  %s329_s22 = sshll.u32 (%p195_p3), %s497_s19, 7  ;;  %s222_s4 = sshll.u32 (%p195_p3), %s129_s6, 4  ;;  %s223_s4 = int_to_ptr.vmem [resolvable:$true] %s222_s4 }
  0x39   : > { %197 = sbr.rel (!%p195_p3) target bundleno = 53 (0x35), region = 126  ;;  %v203_v2 = vld [vmem:[%s660_s2] sm:$0xff] (%p195_p3)  ;;  %s612_s27 = scalar_lea.hbm (%p195_p3), %s661_s3, %s329_s22 }
  0x3a   : > { %v204_v3 = vadd.f32 (%p195_p3), %v203_v2, %v202_v1  ;;  %s208_s7 = scalar_lea.sflag (%p195_p3), [#allocation7], %s127_s30  ;;  %s417_s8 = scalar_lea.vmem (%p195_p3), %s223_s4, 128 }
  0x3b   : > { %p418_p4 = scmp.ne.s32.totalorder (%p195_p3), %s223_s4, %s417_s8  ;;  %s516_s9 = smov (%p195_p3), [#allocation6]  }
  0x3c   : > { %206 = vst.msk [vmem:[%s129_s6] sm:$0xff] (%p195_p3), %vm205_vm0, %v204_v3  ;;  %s421_s19 = sshll.u32 (%p195_p3), %s516_s9, 4  ;;  %s422_s19 = int_to_ptr.vmem [resolvable:$false] %s421_s19 }
  0x3d   : > { %p419_p5 = pnand (%p195_p3), %p418_p4, %p580_p9  ;;  %s423_s10 = scalar_lea.vmem (%p195_p3), %s422_s19, 256 }
  0x3e   : > { %p424_p7 = scmp.lt.s32.totalorder %s223_s4, %s422_s19  ;;  %p425_p8 = scmp.lt.s32.totalorder %s423_s10, %s417_s8 }
  0x3f   : > { %p420_p6 = pneg %p419_p5 }
  0x40   : > { %p426_p10 = por %p425_p8, %p424_p7 }
  0x42   : > { %p427_p11 = pnand %p426_p10, %p420_p6 }
  0x44   : > { %430 = shalt.err (!%p427_p11)
}
  0x45   : > { %s431_s5 = scalar_lea.hbm %s612_s27, 128  ;;  %s435_s11 = scalar_lea.hbm %s661_s3, 256 }
  0x46   : > { %p432_p12 = scmp.ne.s32.totalorder %s612_s27, %s431_s5  ;;  %p436_p2 = scmp.lt.s32.totalorder %s612_s27, %s661_s3 }
  0x47   : > { %p437_p3 = scmp.lt.s32.totalorder %s435_s11, %s431_s5 }
  0x48   : > { %p433_p0 = pnand %p432_p12, %p580_p9 }
  0x49   : > { %p438_p4 = por %p437_p3, %p436_p2 }
  0x4a   : > { %p434_p1 = pneg %p433_p0 }
  0x4c   : > { %p439_p5 = pnand %p438_p4, %p434_p1 }
  0x4e   : > { %442 = shalt.err (!%p439_p5)
}
  0x4f   : > { %333 = dma.vmem_to_hbm [thread:$0]  (%p580_p9), %s223_s4, 128, %s612_s27, %s208_s7  }
  0x50 PF: > { %p339_p6 = scmp.ge.s32.totalorder %s505_s21, 2  ;;  %s234_s14 = sand.u32 1, %s485_s17  }
  0x51   : > { %s235_s15 = scalar_lea.sflag [#allocation7], %s234_s14 }
  0x52   : > { %p336_p7 = pnand %p339_p6, %p587_p13 }
  0x54   : > { %p337_p8 = pneg %p336_p7 }
  0x56   : > { %480 = dma.done.wait (%p337_p8), %s235_s15, 128  }
  0x57   : > { %482 = vsyncadd (%p337_p8), %s235_s15, 4294967168  ;;  %s22_s21 = sadd.s32 1, %s505_s21   ;;  %s664_s17 = smov %s489_s18 }
  0x58   : > { %p19_p10 = scmp.ge.s32.totalorder %s22_s21, 4   ;;  %s665_s18 = smov %s493_s0 }
  0x59   : > { %s666_s0 = smov %s593_s29  ;;  %s667_s19 = smov %s501_s20 }
  0x5a   : > { %s668_s20 = smov %s670_s24  ;;  %21 = sbr.rel (!%p19_p10) target bundleno = 19 (0x13), region = 137 }
  0x5f   :  { %240 = vsyncpa [#allocation7], 1 }
  0x60   :  { %242 = vsyncpa [#allocation7 + $0x1], 1 }
  0x61   :  { %243 = vsyncmov [#allocation3] }
  0x64   :  { %s244_s26 = vpop.sfrf %243 }
  0x65   :  { %p332_p9 = scmp.ne.s32.totalorder %s244_s26, 0 }
  0x67   :  { %248 = shalt.err (%p332_p9)  }

</bundles_post_ra>
